<compile_context>
chip_gen: v7x
topology: tpu7x:2x2x1
jax: 0.10.0
libtpu: 0.0.40
codegen_flags: <defaults>
</compile_context>

<pallas_src>
import math
from functools import partial

import jax
import jax.numpy as jnp
from jax.experimental import pallas as pl
from jax.experimental.pallas import tpu as pltpu


# ----------------------------------------------------------------------------
# Generation-aware budgets
# ----------------------------------------------------------------------------
def _query_vmem_capacity():
    try:
        info = pltpu.get_tpu_info()
        cap = getattr(info, "vmem_capacity_bytes", None)
        if cap:
            return int(cap)
    except Exception:
        pass
    return 64 * 1024 * 1024          # conservative (v7x per-TC) / unknown


_VMEM_CAP_BYTES = _query_vmem_capacity()
if _VMEM_CAP_BYTES >= 96 * 1024 * 1024:          # v5e / v6e: 128 MiB VMEM
    _VMEM_LIMIT_BYTES = 96 * 1024 * 1024
    _TILE_BUDGET_BYTES = 40 * 1024 * 1024
    _BN_FUSED_MAX_BYTES = 24 * 1024 * 1024       # cap on fused-BN working set
else:                                            # v7x (64 MiB / TC) or unknown
    _VMEM_LIMIT_BYTES = 48 * 1024 * 1024
    _TILE_BUDGET_BYTES = 20 * 1024 * 1024
    _BN_FUSED_MAX_BYTES = 8 * 1024 * 1024


def _round_up(x, m):
    return ((x + m - 1) // m) * m


def _lcm(a, b):
    return a * b // math.gcd(a, b)


def _mosaic_params(semantics):
    return pltpu.CompilerParams(dimension_semantics=semantics,
                                vmem_limit_bytes=_VMEM_LIMIT_BYTES)


def _pick_row_tile(m, per_row_bytes, *, base=8, fixed_bytes=0, max_rows=8192):
    """Row tile: multiple of `base`, double-buffered working set under budget.
    The caller pads M up to a multiple of the tile, so an awkward M never
    silently allocates a full-M VMEM block."""
    budget = max(_TILE_BUDGET_BYTES - fixed_bytes, per_row_bytes * base)
    cap = budget // max(per_row_bytes, 1)
    cap = max(base, min(max_rows, cap))
    cap = max((cap // base) * base, base)
    return int(min(cap, _round_up(m, base)))


def _fold_factor(M, C):
    """Fold factor f so [M, C] can be viewed as [M//f, f*C] with lane-dense
    (>=128-lane, multiple-of-128 when possible) rows."""
    if C >= 128:
        return 1
    f = 1
    while (f * C) % 128 != 0 and f < 1024:
        f *= 2
    while f > 1 and M % f != 0:
        f //= 2
    return max(f, 1)


# ----------------------------------------------------------------------------
# Pallas kernels
# ----------------------------------------------------------------------------
def _matmul_kernel(a_ref, b_ref, o_ref):
    # bf16 x bf16 on the MXU, f32 accumulation, bf16 store.
    o_ref[...] = jnp.dot(a_ref[...], b_ref[...],
                         preferred_element_type=jnp.float32).astype(o_ref.dtype)


def _deconv_colmerge_kernel(a_ref, w_ref, o_ref, *, W, C):
    """Matmul + fused column-parity half of col2im for ConvT(k=4, s=2, p=1).

    a: [tm, K]   bf16, rows = input pixels (w fastest), tm % W == 0
    w: [K, 16*C] bf16, lanes ordered (kw, kh, c)
    o: [tm, 8*C] bf16, lanes ordered (q = ow parity, kh, c)
    """
    col = jnp.dot(a_ref[...], w_ref[...], preferred_element_type=jnp.float32)
    tm = col.shape[0]
    G = 4 * C
    kw0 = col[:, 0 * G:1 * G]
    kw1 = col[:, 1 * G:2 * G]
    kw2 = col[:, 2 * G:3 * G]
    kw3 = col[:, 3 * G:4 * G]

    zero = jnp.zeros((1, G), jnp.float32)
    down = jnp.concatenate([zero, kw3[:tm - 1, :]], axis=0)   # down[r] = kw3[r-1]
    up = jnp.concatenate([kw0[1:, :], zero], axis=0)          # up[r]   = kw0[r+1]

    rows = jax.lax.broadcasted_iota(jnp.int32, (tm, 1), 0)
    wpos = (rows & (W - 1)) if (W & (W - 1)) == 0 else (rows % W)

    # output column ow = 2*iw + kw - 1:
    #   even ow=2w : kw=1 @ w  +  kw=3 @ w-1   (dropped at w==0)
    #   odd  ow=2w+1: kw=2 @ w  +  kw=0 @ w+1   (dropped at w==W-1)
    even = kw1 + jnp.where(wpos == 0, 0.0, down)
    odd = kw2 + jnp.where(wpos == W - 1, 0.0, up)
    o_ref[...] = jnp.concatenate([even, odd], axis=-1).astype(o_ref.dtype)


def _lane_group_allsum(s, fold, c):
    # Cyclic tree-sum of the `fold` lane groups (each `c` lanes wide): after
    # log2(fold) XLU rolls every lane holds its channel's total.
    g = c
    while g < fold * c:
        s = s + pltpu.roll(s, g, 1)
        g *= 2
    return s


def _bn_relu_fused_kernel(x_ref, o_ref, *, eps, fold, c):
    # Single-pass training-mode BatchNorm (gamma=1, beta=0) + ReLU on a
    # lane-folded [M//fold, fold*c] view.  Stats in f32, two-pass variance.
    x = x_ref[...].astype(jnp.float32)
    n = x.shape[0] * fold                                        # rows / channel
    mean = _lane_group_allsum(jnp.sum(x, axis=0, keepdims=True), fold, c) * (1.0 / n)
    d = x - mean
    var = _lane_group_allsum(jnp.sum(d * d, axis=0, keepdims=True), fold, c) * (1.0 / n)
    y = d * jax.lax.rsqrt(var + eps)
    o_ref[...] = jnp.maximum(y, 0.0).astype(o_ref.dtype)


def _bn_stats_kernel(x_ref, sum_ref, ssq_ref):
    # Tiled sum / sum-of-squares reduction into an (8, L) resident accumulator
    # (one row per sublane group -> clean VPU adds, no per-tile XLU reduce).
    @pl.when(pl.program_id(0) == 0)
    def _init():
        sum_ref[...] = jnp.zeros_like(sum_ref)
        ssq_ref[...] = jnp.zeros_like(ssq_ref)

    x = x_ref[...].astype(jnp.float32)                           # [tm, L], tm % 8 == 0
    tm, L = x.shape
    xr = x.reshape(tm // 8, 8, L)
    sum_ref[...] += jnp.sum(xr, axis=0)
    ssq_ref[...] += jnp.sum(xr * xr, axis=0)


def _affine_act_kernel(x_ref, scale_ref, shift_ref, o_ref, *, act):
    y = x_ref[...].astype(jnp.float32) * scale_ref[...] + shift_ref[...]
    if act == "relu":
        y = jnp.maximum(y, 0.0)
    elif act == "tanh":
        y = jnp.tanh(y)
    o_ref[...] = y.astype(o_ref.dtype)


# ----------------------------------------------------------------------------
# Pallas wrappers
# ----------------------------------------------------------------------------
def pallas_matmul(a, b, out_dtype=jnp.bfloat16):
    """[M,K] @ [K,N] -> out_dtype [M,N].  bf16 MXU operands, f32 accumulation,
    row-tiled 'parallel' grid, full K/N per block."""
    M, K = a.shape
    K2, N = b.shape
    assert K == K2
    a16, b16 = a.astype(jnp.bfloat16), b.astype(jnp.bfloat16)

    tm = _pick_row_tile(M, 4 * K + 8 * N, fixed_bytes=4 * K * N, max_rows=2048)
    Mp = _round_up(M, tm)
    if Mp != M:
        a16 = jnp.pad(a16, ((0, Mp - M), (0, 0)))

    out = pl.pallas_call(
        _matmul_kernel,
        grid=(Mp // tm,),
        in_specs=[pl.BlockSpec((tm, K), lambda i: (i, 0)),
                  pl.BlockSpec((K, N), lambda i: (0, 0))],
        out_specs=pl.BlockSpec((tm, N), lambda i: (i, 0)),
        out_shape=jax.ShapeDtypeStruct((Mp, N), out_dtype),
        compiler_params=_mosaic_params(("parallel",)),
    )(a16, b16)
    return out if Mp == M else out[:M]


def pallas_deconv_colmerge(x2d, wmat, *, W, Cout, tile_rows=None):
    """[M,Cin] @ [Cin,16*Cout] with the column-parity col2im pass fused in the
    epilogue.  Returns [M, 8*Cout] bf16 with lanes ordered (ow parity, kh, c)."""
    M, K = x2d.shape
    N = wmat.shape[1]
    assert N == 16 * Cout and M % W == 0
    a16, b16 = x2d.astype(jnp.bfloat16), wmat.astype(jnp.bfloat16)

    base = _lcm(8, W)
    if tile_rows is not None:
        assert tile_rows % base == 0
        tm = tile_rows
    else:
        tm = _pick_row_tile(M, 4 * K + 160 * Cout,
                            base=base, fixed_bytes=64 * K * Cout, max_rows=2048)
    Mp = _round_up(M, tm)
    if Mp != M:
        a16 = jnp.pad(a16, ((0, Mp - M), (0, 0)))     # zero rows; sliced off below

    out = pl.pallas_call(
        partial(_deconv_colmerge_kernel, W=W, C=Cout),
        grid=(Mp // tm,),
        in_specs=[pl.BlockSpec((tm, K), lambda i: (i, 0)),
                  pl.BlockSpec((K, N), lambda i: (0, 0))],
        out_specs=pl.BlockSpec((tm, 8 * Cout), lambda i: (i, 0)),
        out_shape=jax.ShapeDtypeStruct((Mp, 8 * Cout), jnp.bfloat16),
        compiler_params=_mosaic_params(("parallel",)),
    )(a16, b16)
    return out if Mp == M else out[:M]


def pallas_bn_relu_fused(x2d, eps, out_dtype=jnp.bfloat16):
    """Single-pass BN(training stats, gamma=1, beta=0) + ReLU, lane-folded."""
    M, C = x2d.shape
    f = _fold_factor(M, C)
    Mf, L = M // f, f * C
    xf = x2d.reshape(Mf, L)
    out = pl.pallas_call(
        partial(_bn_relu_fused_kernel, eps=eps, fold=f, c=C),
        grid=(1,),
        in_specs=[pl.BlockSpec((Mf, L), lambda i: (0, 0))],
        out_specs=pl.BlockSpec((Mf, L), lambda i: (0, 0)),
        out_shape=jax.ShapeDtypeStruct((Mf, L), out_dtype),
        compiler_params=_mosaic_params(("arbitrary",)),
    )(xf)
    return out.reshape(M, C)


def pallas_bn_stats(xf, *, tile_rows=None):
    """Per-lane sum / sum-of-squares of xf:[Mf, L], returned as (8, L) partials."""
    Mf, L = xf.shape
    if tile_rows is not None:
        assert tile_rows % 8 == 0
        tm = tile_rows
    else:
        tm = _pick_row_tile(Mf, 4 * L, fixed_bytes=16 * 8 * L)
    Mp = _round_up(Mf, tm)
    xp = jnp.pad(xf, ((0, Mp - Mf), (0, 0))) if Mp != Mf else xf
    return pl.pallas_call(
        _bn_stats_kernel,
        grid=(Mp // tm,),
        in_specs=[pl.BlockSpec((tm, L), lambda i: (i, 0))],
        out_specs=(pl.BlockSpec((8, L), lambda i: (0, 0)),
                   pl.BlockSpec((8, L), lambda i: (0, 0))),
        out_shape=(jax.ShapeDtypeStruct((8, L), jnp.float32),
                   jax.ShapeDtypeStruct((8, L), jnp.float32)),
        compiler_params=_mosaic_params(("arbitrary",)),
    )(xp)


def pallas_affine_act(xf, scale_f, shift_f, *, act, out_dtype, tile_rows=None):
    """y = act(x * scale + shift) on a lane-folded [Mf, L] view, row-tiled."""
    Mf, L = xf.shape
    if tile_rows is not None:
        assert tile_rows % 8 == 0
        tm = tile_rows
    else:
        tm = _pick_row_tile(Mf, 12 * L, fixed_bytes=16 * L)
    Mp = _round_up(Mf, tm)
    xp = jnp.pad(xf, ((0, Mp - Mf), (0, 0))) if Mp != Mf else xf
    out = pl.pallas_call(
        partial(_affine_act_kernel, act=act),
        grid=(Mp // tm,),
        in_specs=[pl.BlockSpec((tm, L), lambda i: (i, 0)),
                  pl.BlockSpec((1, L), lambda i: (0, 0)),
                  pl.BlockSpec((1, L), lambda i: (0, 0))],
        out_specs=pl.BlockSpec((tm, L), lambda i: (i, 0)),
        out_shape=jax.ShapeDtypeStruct((Mp, L), out_dtype),
        compiler_params=_mosaic_params(("parallel",)),
    )(xp, scale_f.astype(jnp.float32), shift_f.astype(jnp.float32))
    return out if Mp == Mf else out[:Mf]


def pallas_bias_tanh(x2d, b):
    """y = tanh(x + b[c]) for x:[M,C], lane-folded so stores are dense even
    when C == 1 (the final output layer)."""
    M, C = x2d.shape
    f = _fold_factor(M, C)
    xf = x2d.reshape(M // f, f * C)
    ones = jnp.ones((1, f * C), jnp.float32)
    bias = jnp.tile(b.astype(jnp.float32), f).reshape(1, f * C)
    y = pallas_affine_act(xf, ones, bias, act="tanh", out_dtype=jnp.float32)
    return y.reshape(M, C)


# ----------------------------------------------------------------------------
# Layer helpers
# ----------------------------------------------------------------------------
def _batchnorm_relu_tiled(x2d, eps, *, tile_rows=None):
    """Tiled path: Pallas stats reduction (8,L accumulator) + affine + ReLU."""
    M, C = x2d.shape
    f = _fold_factor(M, C)
    xf = x2d.reshape(M // f, f * C)
    s8, ss8 = pallas_bn_stats(xf, tile_rows=tile_rows)
    s = s8.sum(0).reshape(f, C).sum(0)
    ss = ss8.sum(0).reshape(f, C).sum(0)
    mean = s / M
    var = jnp.maximum(ss / M - mean * mean, 0.0)      # biased, as torch BN fwd
    scale = jax.lax.rsqrt(var + eps)
    shift = -mean * scale
    scale_f = jnp.tile(scale, f).reshape(1, f * C)
    shift_f = jnp.tile(shift, f).reshape(1, f * C)
    y = pallas_affine_act(xf, scale_f, shift_f, act="relu",
                          out_dtype=jnp.bfloat16, tile_rows=tile_rows)
    return y.reshape(M, C)


def batchnorm_relu(x2d, eps=1e-5):
    """Training-mode BatchNorm (gamma=1, beta=0) + ReLU on x2d:[B*H*W, C]."""
    M, C = x2d.shape
    if M * C * 8 <= _BN_FUSED_MAX_BYTES:              # fused working set fits
        return pallas_bn_relu_fused(x2d, eps)
    return _batchnorm_relu_tiled(x2d, eps)


def deconv1x1_input(x_flat, w):
    """ConvTranspose2d on a 1x1 spatial input (padding=0) -> NHWC [B,4,4,Cout].
    Bias omitted: it feeds training-mode BatchNorm where it cancels exactly."""
    B, Cin = x_flat.shape
    Cout = w.shape[1]
    wmat = jnp.transpose(w, (0, 2, 3, 1)).reshape(Cin, 16 * Cout)   # (kh,kw,co)
    col = pallas_matmul(x_flat, wmat)                               # [B, 16*Cout] bf16
    return col.reshape(B, 4, 4, Cout)


def _row_merge_xla(rw, B, H, W, C):
    """Row-parity half of col2im (cheap bf16 shifted adds in XLA)."""
    r = rw.reshape(B, H, W, 2, 4, C)                  # (q, kh, c) lanes
    z = jnp.zeros((B, 1, W, 2, C), rw.dtype)
    # output row oh = 2*ih + kh - 1:
    #   even oh=2h : kh=1 @ h  +  kh=3 @ h-1
    #   odd  oh=2h+1: kh=2 @ h  +  kh=0 @ h+1
    even = r[:, :, :, :, 1, :] + jnp.concatenate([z, r[:, :-1, :, :, 3, :]], axis=1)
    odd = r[:, :, :, :, 2, :] + jnp.concatenate([r[:, 1:, :, :, 0, :], z], axis=1)
    out = jnp.stack([even, odd], axis=2)              # [B, H, 2, W, 2, C]
    return out.reshape(B, 2 * H, 2 * W, C)


def deconv_k4s2p1(x_nhwc, w, *, tile_rows=None):
    """ConvTranspose2d(kernel=4, stride=2, padding=1), no bias.
    x:[B,H,W,Cin] -> [B,2H,2W,Cout] (bf16).  Channel contraction + column
    merge in Pallas; only the row-parity merge remains as XLA glue."""
    B, H, W, Cin = x_nhwc.shape
    Cout = w.shape[1]
    wmat = jnp.transpose(w, (0, 3, 2, 1)).reshape(Cin, 16 * Cout)   # (kw,kh,co)
    rw = pallas_deconv_colmerge(x_nhwc.reshape(B * H * W, Cin), wmat,
                                W=W, Cout=Cout, tile_rows=tile_rows)
    return _row_merge_xla(rw, B, H, W, Cout)


def _reference_deconv_k4s2p1(x_nhwc, w):
    """Naive scatter-add reference (mirrors torch ConvTranspose2d, no bias)."""
    B, H, W, Cin = x_nhwc.shape
    Cout = w.shape[1]
    col = jnp.einsum("bhwc,cokl->bhwklo", x_nhwc, w)        # [B,H,W,kh,kw,Cout]
    full = jnp.zeros((B, 2 * H + 2, 2 * W + 2, Cout), jnp.float32)
    for kh in range(4):
        for kw in range(4):
            full = full.at[:, kh:kh + 2 * H:2, kw:kw + 2 * W:2, :].add(
                col[:, :, :, kh, kw, :])
    return full[:, 1:2 * H + 1, 1:2 * W + 1, :]


def _bn_relu_ref(x, eps):
    m = x.mean(axis=0)
    v = jnp.mean((x - m) ** 2, axis=0)
    return jnp.maximum((x - m) * jax.lax.rsqrt(v + eps), 0.0)


# ----------------------------------------------------------------------------
# Parameter init (deterministic, matching the PyTorch module's shapes/init)
# ----------------------------------------------------------------------------
def init_generator_params(key, input_dim, label_dim, filter_sizes, output_dim):
    keys = jax.random.split(key, 3 + len(filter_sizes))
    c_half = filter_sizes[0] // 2
    params = {
        "img_w": 0.02 * jax.random.normal(keys[0], (input_dim, c_half, 4, 4), jnp.float32),
        "img_b": jnp.zeros((c_half,), jnp.float32),     # cancels through BN
        "lab_w": 0.02 * jax.random.normal(keys[1], (label_dim, c_half, 4, 4), jnp.float32),
        "lab_b": jnp.zeros((c_half,), jnp.float32),     # cancels through BN
        "hidden": [],
        "out_w": 0.02 * jax.random.normal(keys[2], (filter_sizes[-1], output_dim, 4, 4), jnp.float32),
        "out_b": jnp.zeros((output_dim,), jnp.float32),
    }
    for i in range(1, len(filter_sizes)):
        w = 0.02 * jax.random.normal(keys[2 + i],
                                     (filter_sizes[i - 1], filter_sizes[i], 4, 4), jnp.float32)
        params["hidden"].append((w, jnp.zeros((filter_sizes[i],), jnp.float32)))
    return params


# ----------------------------------------------------------------------------
# Forward pass (matches Generator.forward semantics; output in NCHW, f32)
# ----------------------------------------------------------------------------
def generator_forward(params, noise, labels, *, label_dim, filter_sizes, eps=1e-5):
    B, input_dim = noise.shape[0], noise.shape[1]
    c_half = filter_sizes[0] // 2

    z = noise.reshape(B, input_dim).astype(jnp.float32)
    onehot = jax.nn.one_hot(labels, label_dim, dtype=jnp.float32)   # == g_fill[labels]

    # image branch: ConvTranspose(input_dim -> c_half, k=4, s=1, p=0) + BN + ReLU
    h1 = deconv1x1_input(z, params["img_w"])                          # [B,4,4,c_half]
    h1 = batchnorm_relu(h1.reshape(B * 16, c_half), eps).reshape(B, 4, 4, c_half)

    # label branch: ConvTranspose(label_dim -> c_half, k=4, s=2, p=0) + BN + ReLU
    h2 = deconv1x1_input(onehot, params["lab_w"])                     # [B,4,4,c_half]
    h2 = batchnorm_relu(h2.reshape(B * 16, c_half), eps).reshape(B, 4, 4, c_half)

    # channel concat (NHWC channel axis == NCHW dim 1)
    x = jnp.concatenate([h1, h2], axis=-1)                            # [B,4,4,fs[0]] bf16

    # hidden deconv stack (bias dropped: cancels exactly through training-mode BN)
    for (w, _b) in params["hidden"]:
        x = deconv_k4s2p1(x, w)
        Bc, Hc, Wc, Cc = x.shape
        x = batchnorm_relu(x.reshape(Bc * Hc * Wc, Cc), eps).reshape(Bc, Hc, Wc, Cc)

    # output deconv + fused bias + tanh (lane-folded: output_dim may be 1)
    x = deconv_k4s2p1(x, params["out_w"])
    Bc, Hc, Wc, Cc = x.shape
    x = pallas_bias_tanh(x.reshape(Bc * Hc * Wc, Cc), params["out_b"])
    return jnp.transpose(x.reshape(Bc, Hc, Wc, Cc), (0, 3, 1, 2))     # NCHW f32


# ----------------------------------------------------------------------------
if __name__ == "__main__":
    B = 2
    input_dim = 8          # latent dim
    label_dim = 4
    filter_sizes = [32, 16]
    output_dim = 1

    key = jax.random.PRNGKey(0)
    k_param, k_noise, k_lab, k_chk_x, k_chk_w, k_chk_bn = jax.random.split(key, 6)

    # --- self-check 1: fused transposed-conv path vs naive scatter reference ---
    # (tile_rows forces a 4-step grid so tile-boundary masking is exercised)
    x_chk = jax.random.normal(k_chk_x, (2, 16, 16, 32), jnp.float32)
    w_chk = 0.02 * jax.random.normal(k_chk_w, (32, 16, 4, 4), jnp.float32)
    fast = deconv_k4s2p1(x_chk, w_chk, tile_rows=128).astype(jnp.float32)
    ref = _reference_deconv_k4s2p1(x_chk, w_chk)
    err = float(jnp.max(jnp.abs(fast - ref)))
    assert err < 3e-2, f"col2im/matmul mismatch, max abs err {err}"   # bf16 tolerance

    # --- self-check 2: tiled BN path and fused BN path vs f32 reference --------
    x_bn = jax.random.normal(k_chk_bn, (2048, 32), jnp.float32)
    bn_ref = _bn_relu_ref(x_bn, 1e-5)
    bn_tiled = _batchnorm_relu_tiled(x_bn, 1e-5, tile_rows=128).astype(jnp.float32)
    bn_fused = pallas_bn_relu_fused(x_bn, 1e-5).astype(jnp.float32)
    e1 = float(jnp.max(jnp.abs(bn_tiled - bn_ref)))
    e2 = float(jnp.max(jnp.abs(bn_fused - bn_ref)))
    assert e1 < 5e-2, f"tiled BN mismatch, max abs err {e1}"
    assert e2 < 5e-2, f"fused BN mismatch, max abs err {e2}"

    # --- full generator forward -------------------------------------------------
    params = init_generator_params(k_param, input_dim, label_dim, filter_sizes, output_dim)
    noise = jax.random.normal(k_noise, (B, input_dim, 1, 1), jnp.float32)
    labels = jax.random.randint(k_lab, (B,), 0, label_dim)

    fwd = jax.jit(partial(generator_forward, label_dim=label_dim,
                          filter_sizes=filter_sizes))
    out = jax.block_until_ready(fwd(params, noise, labels))

    # expected: [B, output_dim, 16, 16] (4x4 -> 8x8 -> 16x16), values in [-1, 1]
    assert out.shape == (B, output_dim, 16, 16), out.shape
    assert bool(jnp.all(jnp.isfinite(out)))
    assert bool(jnp.all(jnp.abs(out) <= 1.0))
    print("KERNEL_OK")
</pallas_src>

<mosaic_0001>
module attributes {stable_mosaic.version = 11 : i64} {
  func.func @_deconv_colmerge_kernel(%arg0: i32, %arg1: memref<128x32xbf16, #tpu.memory_space<vmem>>, %arg2: memref<32x256xbf16, #tpu.memory_space<vmem>>, %arg3: memref<128x128xbf16, #tpu.memory_space<vmem>>) attributes {dimension_semantics = [#tpu.dimension_semantics<parallel>], iteration_bounds = array<i64: 4>, scalar_prefetch = 0 : i64, scratch_operands = 0 : i64, tpu.core_type = #tpu.core_type<tc>, window_params = [{transform_indices = @transform_0, window_bounds = array<i64: 128, 32>}, {pipeline_mode = #tpu.pipeline_mode<synchronous>, transform_indices = @transform_1, window_bounds = array<i64: 32, 256>}, {transform_indices = @transform_2, window_bounds = array<i64: 128, 128>}]} {
    %c0 = arith.constant 0 : index
    %c0_0 = arith.constant 0 : index
    %0 = vector.load %arg1[%c0, %c0_0] : memref<128x32xbf16, #tpu.memory_space<vmem>>, vector<128x32xbf16>
    %c0_1 = arith.constant 0 : index
    %c0_2 = arith.constant 0 : index
    %1 = vector.load %arg2[%c0_1, %c0_2] : memref<32x256xbf16, #tpu.memory_space<vmem>>, vector<32x256xbf16>
    %cst = arith.constant dense<0.000000e+00> : vector<128x256xf32>
    %2 = tpu.matmul %0, %1, %cst {dimension_numbers = #tpu.dot_dimension_numbers<[1], [0], [0], [1], [0, 0, 1, 1], [], []>} : vector<128x32xbf16>, vector<32x256xbf16>, vector<128x256xf32> -> vector<128x256xf32>
    %3 = vector.extract_strided_slice %2 {offsets = [0, 0], sizes = [128, 64], strides = [1, 1]} : vector<128x256xf32> to vector<128x64xf32>
    %4 = vector.extract_strided_slice %2 {offsets = [0, 64], sizes = [128, 64], strides = [1, 1]} : vector<128x256xf32> to vector<128x64xf32>
    %5 = vector.extract_strided_slice %2 {offsets = [0, 128], sizes = [128, 64], strides = [1, 1]} : vector<128x256xf32> to vector<128x64xf32>
    %6 = vector.extract_strided_slice %2 {offsets = [0, 192], sizes = [128, 64], strides = [1, 1]} : vector<128x256xf32> to vector<128x64xf32>
    %cst_3 = arith.constant 0.000000e+00 : f32
    %7 = vector.broadcast %cst_3 : f32 to vector<1x64xf32>
    %8 = vector.extract_strided_slice %6 {offsets = [0, 0], sizes = [127, 64], strides = [1, 1]} : vector<128x64xf32> to vector<127x64xf32>
    %9 = tpu.concatenate %7, %8 in 0 : vector<1x64xf32>, vector<127x64xf32> -> vector<128x64xf32>
    %10 = vector.extract_strided_slice %3 {offsets = [1, 0], sizes = [127, 64], strides = [1, 1]} : vector<128x64xf32> to vector<127x64xf32>
    %11 = tpu.concatenate %10, %7 in 0 : vector<127x64xf32>, vector<1x64xf32> -> vector<128x64xf32>
    %12 = tpu.iota {dimensions = array<i32: 0>} : vector<128x1xi32>
    %c15_i32 = arith.constant 15 : i32
    %13 = vector.broadcast %c15_i32 : i32 to vector<128x1xi32>
    %14 = arith.andi %12, %13 : vector<128x1xi32>
    %c0_i32 = arith.constant 0 : i32
    %15 = vector.broadcast %c0_i32 : i32 to vector<128x1xi32>
    %16 = arith.cmpi eq, %14, %15 : vector<128x1xi32>
    %cst_4 = arith.constant 0.000000e+00 : f32
    %17 = vector.shape_cast %16 : vector<128x1xi1> to vector<128x1xi1>
    %18 = vector.broadcast %17 : vector<128x1xi1> to vector<128x64xi1>
    %19 = vector.broadcast %cst_4 : f32 to vector<128x64xf32>
    %20 = arith.select %18, %19, %9 : vector<128x64xi1>, vector<128x64xf32>
    %21 = arith.addf %4, %20 : vector<128x64xf32>
    %c15_i32_5 = arith.constant 15 : i32
    %22 = vector.broadcast %c15_i32_5 : i32 to vector<128x1xi32>
    %23 = arith.cmpi eq, %14, %22 : vector<128x1xi32>
    %cst_6 = arith.constant 0.000000e+00 : f32
    %24 = vector.shape_cast %23 : vector<128x1xi1> to vector<128x1xi1>
    %25 = vector.broadcast %24 : vector<128x1xi1> to vector<128x64xi1>
    %26 = vector.broadcast %cst_6 : f32 to vector<128x64xf32>
    %27 = arith.select %25, %26, %11 : vector<128x64xi1>, vector<128x64xf32>
    %28 = arith.addf %5, %27 : vector<128x64xf32>
    %29 = tpu.concatenate %21, %28 in 1 : vector<128x64xf32>, vector<128x64xf32> -> vector<128x128xf32>
    %30 = arith.truncf %29 : vector<128x128xf32> to vector<128x128xbf16>
    %c0_7 = arith.constant 0 : index
    %c0_8 = arith.constant 0 : index
    %31 = vector.load %arg3[%c0_7, %c0_8] : memref<128x128xbf16, #tpu.memory_space<vmem>>, vector<128x128xbf16>
    tpu.vector_store %arg3[%c0_7, %c0_8], %30 {strides = array<i32>} : memref<128x128xbf16, #tpu.memory_space<vmem>>, vector<128x128xbf16>,
    return
  }
  func.func @transform_0(%arg0: i32) -> (i32, i32) {
    %c0_i32 = arith.constant 0 : i32
    %c0_i32_0 = arith.constant 0 : i32
    return %arg0, %c0_i32 : i32, i32
  }
  func.func @transform_1(%arg0: i32) -> (i32, i32) {
    %c0_i32 = arith.constant 0 : i32
    %c0_i32_0 = arith.constant 0 : i32
    %c0_i32_1 = arith.constant 0 : i32
    return %c0_i32, %c0_i32_0 : i32, i32
  }
  func.func @transform_2(%arg0: i32) -> (i32, i32) {
    %c0_i32 = arith.constant 0 : i32
    %c0_i32_0 = arith.constant 0 : i32
    return %arg0, %c0_i32 : i32, i32
  }
}

</mosaic_0001>

<bundles_post_ra>
// kernel: tpu_custom_call.1
= control target key start
LH: loop header
LB: loop body
LE: loop exit
PB: predicated region body
PF: predicated region fallthrough
CT: control target
= control target key end

     0   :  { %7 = vsyncpa [#allocation3], 0  ;;  %s1889_s0 = inlined_call_operand.vmem [shape: bf16[512,32], index: 0, kind: input, shape index: {}]   ;;  %s1890_s1 = inlined_call_operand.vmem [shape: bf16[32,256], index: 1, kind: input, shape index: {}]   ;;  %s1891_s2 = inlined_call_operand.hbm [shape: bf16[512,128], index: 2, kind: output, shape index: {}]  }
   0x1   :  { %9 = vsyncpa [#allocation3 + $0x1], 0  ;;  %s1419_s9 = smov 0   ;;  %s1421_s10 = smov 0  }
   0x2   :  { %s1423_s11 = smov 0   ;;  %s1425_s12 = smov 0  }
   0x3 LB: > { %s1440_s13 = sadd.s32 4294967295, %s1398_s12   ;;  %s1084_s14 = sadd.s32 4294967294, %s1398_s12   ;;  %s1398_s12 = sphi %s1425_s12, %s1915_s12   ;;  %s1394_s11 = sphi %s1423_s11, %s1914_s11   ;;  %s1390_s10 = sphi %s1421_s10, %s1913_s10   ;;  %s1386_s9 = sphi %s1419_s9, %s1912_s9  }
   0x4   : > { %s1444_s15 = sadd.s32 1, %s1398_s12   ;;  %s69_s16 = sadd.s32 1, %s1394_s11 }
   0x5   : > { %s66_s17 = ssub.s32 %s1398_s12, %s1444_s15  ;;  %p79_p0 = scmp.ne.s32.totalorder %s1394_s11, %s1390_s10 }
   0x6   : > { %p67_p1 = scmp.eq.s32.totalorder %s66_s17, 0  ;;  %p80_p2 = scmp.eq.s32.totalorder %s1440_s13, 3 }
   0x7   : > { %p85_p3 = scmp.ne.s32.totalorder %s1390_s10, %s1386_s9  ;;  %p86_p4 = scmp.eq.s32.totalorder %s1084_s14, 3 }
   0x8   : > { %s1455_s18 = scalar_select %p67_p1, %s1394_s11, %s69_s16  }
   0x9   : > { %p1457_p5 = por %p80_p2, %p79_p0  ;;  %p1461_p6 = por %p86_p4, %p85_p3 }
   0xa   : > { %p1087_p7 = scmp.ge.s32.totalorder %s1398_s12, 1  ;;  %p116_p8 = scmp.lt.s32.totalorder %s1398_s12, 5 }
   0xc   : > { %p117_p9 = pnand %p1087_p7, %p116_p8 }
   0xd   : > { %v1322_v0 = vld [vmem:[%s1890_s1 + $0x4] ss:$8 sps:$4 sm:$0xff] (!%p117_p9)   ;;  %s1089_s23 = sshll.u32 (!%p117_p9), %s1440_s13, 4  ;;  %v1324_v1 = vld [vmem:[%s1890_s1] ss:$8 sps:$4 sm:$0xff] (!%p117_p9)   ;;  %v1400_v2 = vmov (!%p117_p9), 0   ;;  %v526_v13 = vlaneseq (!%p117_p9) }
   0xe   : > { %120 = sbr.rel (%p117_p9) target bundleno = 653 (0x28d), region = 28  ;;  %283 = vmatprep.mubr.bf16.mxu0 (!%p117_p9), %v1400_v2  ;;  %323 = vmatprep.mubr.bf16.mxu1 (!%p117_p9), %v1400_v2  ;;  %p139_p10 = scmp.lt.s32.totalorder (!%p117_p9), %s1089_s23, 63  ;;  %v1325_v3 = vld [vmem:[%s1890_s1 + $0x14] ss:$8 sps:$4 sm:$0xff] (!%p117_p9)   ;;  %v1327_v4 = vld [vmem:[%s1890_s1 + $0x10] ss:$8 sps:$4 sm:$0xff] (!%p117_p9)  }
   0xf   : > { %251 = vmatprep.subr.bf16.mxu0 (!%p117_p9), %v1322_v0  ;;  %1196 = vmatprep.subr.bf16.mxu1 (!%p117_p9), %v1322_v0  ;;  %vm226_vm0 = vcmask (!%p117_p9), 261120   ;;  %v1491_v14 = vshrl.u32 (!%p117_p9), %v526_v13, 7  ;;  %vm477_vm1 = vcmask (!%p117_p9), 1046528   ;;  %vm380_vm2 = vcmask (!%p117_p9), 1040384   ;;  %s1401_s6 = smov (!%p117_p9), 64   ;;  %s135_s7 = sand.u32 (!%p117_p9), 1, %s1390_s10  }
  0x10   : > { %252 = vmatpush1.bf16.msra.mxu0 (!%p117_p9), %v1324_v1  ;;  %1198 = vmatpush1.bf16.msra.mxu1 (!%p117_p9), %v1324_v1  ;;  %s1088_s8 = sshll.u32 (!%p117_p9), %s135_s7, 6  ;;  %s1148_s16 = sshll.u32 (!%p117_p9), %s1440_s13, 10 }
  0x11   : > { %253 = vmatprep.subr.bf16.mxu0 (!%p117_p9), %v1325_v3  ;;  %1197 = vmatprep.subr.bf16.mxu1 (!%p117_p9), %v1325_v3  ;;  %v528_v15 = vadd.s32 (!%p117_p9), 8, %v1491_v14  ;;  %v536_v18 = vadd.s32 (!%p117_p9), 72, %v1491_v14  ;;  %v530_v37 = vadd.s32 (!%p117_p9), 24, %v1491_v14  ;;  %v538_v51 = vadd.s32 (!%p117_p9), 88, %v1491_v14  ;;  %s1811_s14 = scalar_lea.vmem (!%p117_p9), [#allocation2], %s1088_s8  ;;  %s1846_s13 = scalar_lea.sflag (!%p117_p9), [#allocation3], %s135_s7 }
  0x12   : > { %v1546_v56 = vadd.s32 (!%p117_p9), 56, %v1491_v14  ;;  %v1549_v57 = vadd.s32 (!%p117_p9), 120, %v1491_v14  ;;  %s1022_s17 = sshll.u32 (!%p117_p9), %s1811_s14, 4  ;;  %s1402_s25 = smov (!%p117_p9), [#allocation2]   ;;  %s1841_s17 = int_to_ptr.vmem [resolvable:$true] %s1022_s17 }
  0x13   : > { %v544_v30 = vand.u32 (!%p117_p9), 15, %v528_v15  ;;  %v552_v34 = vand.u32 (!%p117_p9), 15, %v536_v18  ;;  %v546_v50 = vand.u32 (!%p117_p9), 15, %v530_v37  ;;  %s1336_s24 = scalar_lea.vmem (!%p117_p9), %s1841_s17, 1024  ;;  %s1340_s26 = sshll.u32 (!%p117_p9), %s1402_s25, 4  ;;  %s1341_s26 = int_to_ptr.vmem [resolvable:$false] %s1340_s26 }
  0x14   : > { %254 = vmatpush1.bf16.msra.mxu0 (!%p117_p9), %v1327_v4  ;;  %1199 = vmatpush1.bf16.msra.mxu1 (!%p117_p9), %v1327_v4  ;;  %p1337_p11 = scmp.ne.s32.totalorder (!%p117_p9), %s1841_s17, %s1336_s24  ;;  %s1342_s27 = scalar_lea.vmem (!%p117_p9), %s1341_s26, 2048 }
  0x15   : > { %s1917_s23 = smov (!%p139_p10, %s1089_s23), 63  ;;  %vm1530_vm3 = vcmp.eq.s32.totalorder %v544_v30, 15  ;;  %vm1534_vm4 = vcmp.eq.s32.totalorder %v552_v34, 15  ;;  %vm1573_vm5 = vcmp.eq.s32.totalorder %v546_v50, 15  ;;  %p1343_p0 = scmp.lt.s32.totalorder %s1841_s17, %s1341_s26 }
  0x16   : > { %s1090_s30 = sshll.u32 %s1917_s23, 2  ;;  %s1839_s23 = scalar_lea.hbm %s1891_s2, %s1148_s16 }
  0x17   : > { %s142_s5 = scalar_lea.vmem %s1889_s0, %s1090_s30  ;;  %p1338_p12 = pnand %p1337_p11, %p1457_p5 }
  0x18   : > { %v1328_v5 = vld [vmem:[%s142_s5] sm:$0xff]   ;;  %v1330_v7 = vld [vmem:[%s142_s5 + $0x8] sm:$0xff]   ;;  %v1332_v9 = vld [vmem:[%s142_s5 + $0x10] sm:$0xff]   ;;  %p1344_p1 = scmp.lt.s32.totalorder %s1342_s27, %s1336_s24 }
  0x19   : > { %v1329_v6 = vld [vmem:[%s142_s5 + $0x20] sm:$0xff]   ;;  %1103 = vmatmul.mubr.msk.bf16.vlgmr.msra.gmra.mrb[0].mxu0 %vm226_vm0, %v1328_v5  ;;  %v1331_v8 = vld [vmem:[%s142_s5 + $0x28] sm:$0xff]   ;;  %v1333_v10 = vld [vmem:[%s142_s5 + $0x30] sm:$0xff]   ;;  %p1339_p13 = pneg %p1338_p12 }
  0x1a   : > { %1107 = vmatmul.mubr.msk.bf16.vlgmr.msra.gmra.mrb[0].mxu1 %vm226_vm0, %v1329_v6  ;;  %293 = vmatprep.mubr.bf16.mxu0 %v1400_v2  ;;  %v1334_v11 = vld [vmem:[%s142_s5 + $0x18] sm:$0xff]   ;;  %v1565_v6 = vadd.s32 40, %v1491_v14  ;;  %p1345_p2 = por %p1344_p1, %p1343_p0 }
  0x1b   : > { %333 = vmatprep.mubr.bf16.mxu1 %v1400_v2  ;;  %v1335_v12 = vld [vmem:[%s142_s5 + $0x38] sm:$0xff]  }
  0x1c   : > { %p1346_p3 = pnand %p1345_p2, %p1339_p13 }
  0x21   : > { %1104 = vmatmul.mubr.msk.bf16.gmra.mrb[4].mxu0 %vm226_vm0, %v1330_v7 }
  0x22   : > { %1108 = vmatmul.mubr.msk.bf16.gmra.mrb[4].mxu1 %vm226_vm0, %v1331_v8  ;;  %303 = vmatprep.mubr.bf16.mxu0 %v1400_v2 }
  0x23   : > { %343 = vmatprep.mubr.bf16.mxu1 %v1400_v2 }
  0x29   : > { %1105 = vmatmul.mubr.msk.bf16.gmra.mrb[8].mxu0 %vm226_vm0, %v1332_v9 }
  0x2a   : > { %1109 = vmatmul.mubr.msk.bf16.gmra.mrb[8].mxu1 %vm226_vm0, %v1333_v10  ;;  %313 = vmatprep.mubr.bf16.mxu0 %v1400_v2  ;;  %v554_v10 = vand.u32 15, %v538_v51 }
  0x2b   : > { %353 = vmatprep.mubr.bf16.mxu1 %v1400_v2 }
  0x2c   : > { %vm1603_vm6 = vcmp.eq.s32.totalorder %v554_v10, 15 }
  0x31   : > { %1106 = vmatmul.mubr.msk.bf16.gmra.mrb[12].mxu0 %vm226_vm0, %v1334_v11 }
  0x32   : > { %1110 = vmatmul.mubr.msk.bf16.gmra.mrb[12].mxu1 %vm226_vm0, %v1335_v12 }
  0xec   : > { %v1494_v16 = vpop.f32.mrb[0].mxu0 }
  0xed   : > { %v1496_v17 = vpop.f32.mrb[0].mxu1  ;;  %v287_v20 = vpop.f32.mrb[1].mxu0  ;;  %v478_v25 = vrot.slane %v1494_v16, 1 }
  0xee   : > { %v493_v19 = vrot.slane %v1496_v17, 1  ;;  %v1500_v21 = vpop.f32.mrb[1].mxu1  ;;  %v1502_v22 = vpop.f32.mrb[2].mxu0  ;;  %v381_v24 = vrot.slane %v287_v20, 7 }
  0xef   : > { %v1504_v23 = vpop.f32.mrb[2].mxu1  ;;  %v479_v26 = vrot.slane %v1502_v22, 1  ;;  %v291_v28 = vpop.f32.mrb[3].mxu0  ;;  %v396_v31 = vrot.slane %v1500_v21, 7 }
  0xf0   : > { %v495_v27 = vrot.slane %v1504_v23, 1  ;;  %v331_v29 = vpop.f32.mrb[3].mxu1  ;;  %v382_v32 = vrot.slane %v291_v28, 7  ;;  %412 = vrot.lane.b32.xlu0 %v381_v24, %s1401_s6 }
  0xf1   : > { %v398_v33 = vrot.slane %v331_v29, 7  ;;  %v480_v35 = vsel %vm477_vm1, %v478_v25, %v479_v26  ;;  %v558_v25 = vand.u32 15, %v1549_v57 }
  0xf2   : > { %v496_v36 = vsel %vm477_vm1, %v493_v19, %v495_v27  ;;  %v383_v38 = vsel %vm380_vm2, %v381_v24, %v382_v32  ;;  %v1520_v40 = vadd.f32 %v480_v35, %v287_v20  ;;  %v550_v24 = vand.u32 15, %v1546_v56 }
  0xf3   : > { %v399_v39 = vsel %vm380_vm2, %v396_v31, %v398_v33  ;;  %v1523_v41 = vadd.f32 %v496_v36, %v1500_v21  ;;  %v540_v35 = vadd.s32 104, %v1491_v14  ;;  %vm1654_vm8 = vcmp.eq.s32.totalorder %v558_v25, 15 }
  0xf4   : > { %414 = vrot.lane.b32.xlu0 %v383_v38, %s1401_s6  ;;  %v1528_v43 = vpop.f32.mrb[4].mxu0  ;;  %vm1641_vm7 = vcmp.eq.s32.totalorder %v550_v24, 15 }
  0xf5   : > { %v1525_v42 = vpop.f32.mrb[4].mxu1  ;;  %v481_v47 = vrot.slane %v1528_v43, 1  ;;  %v297_v48 = vpop.f32.mrb[5].mxu0 }
  0xf6   : > { %v497_v46 = vrot.slane %v1525_v42, 1  ;;  %v337_v49 = vpop.f32.mrb[5].mxu1  ;;  %v384_v52 = vrot.slane %v297_v48, 7  ;;  %v1541_v54 = vpop.f32.mrb[6].mxu0 }
  0xf7   : > { %v400_v53 = vrot.slane %v337_v49, 7  ;;  %v1543_v55 = vpop.f32.mrb[6].mxu1  ;;  %v482_v59 = vsel %vm477_vm1, %v479_v26, %v481_v47  ;;  %v483_v60 = vrot.slane %v1541_v54, 1  ;;  %v301_v62 = vpop.f32.mrb[7].mxu0 }
  0xf8   : > { %v498_v58 = vsel %vm477_vm1, %v495_v27, %v497_v46  ;;  %v499_v61 = vrot.slane %v1543_v55, 1  ;;  %v1555_v63 = vpop.f32.mrb[7].mxu1  ;;  %v386_v0 = vrot.slane %v301_v62, 7  ;;  %430 = vrot.lane.b32.xlu0 %v399_v39, %s1401_s6  ;;  %v385_v3 = vsel %vm380_vm2, %v382_v32, %v384_v52 }
  0xf9   : > { %v402_v1 = vrot.slane %v1555_v63, 7  ;;  %v401_v2 = vsel %vm380_vm2, %v398_v33, %v400_v53  ;;  %v484_v4 = vsel %vm477_vm1, %v481_v47, %v483_v60  ;;  %v752_v9 = vsel %vm1530_vm3, 0.0, %v482_v59 }
  0xfa   : > { %v500_v5 = vsel %vm477_vm1, %v497_v46, %v499_v61  ;;  %432 = vrot.lane.b32.xlu1 %v401_v2, %s1401_s6  ;;  %v387_v7 = vsel %vm380_vm2, %v384_v52, %v386_v0  ;;  %v1571_v11 = vadd.f32 %v752_v9, %v291_v28  ;;  %v1577_v13 = vadd.f32 %v484_v4, %v297_v48 }
  0xfb   : > { %v403_v8 = vsel %vm380_vm2, %v400_v53, %v402_v1  ;;  %v760_v15 = vsel %vm1534_vm4, 0.0, %v498_v58  ;;  %v1590_v27 = vadd.f32 %v500_v5, %v337_v49  ;;  %v548_v39 = vand.u32 15, %v1565_v6 }
  0xfc   : > { %416 = vrot.lane.b32.xlu0 %v385_v3, %s1401_s6  ;;  %v1584_v20 = vpop.f32.mrb[8].mxu0  ;;  %v1588_v26 = vadd.f32 %v760_v15, %v331_v29  ;;  %v1242_v34 = vpack.i.bf16 %v1571_v11, %v1520_v40  ;;  %vm911_vm3 = vcmask 523264  }
  0xfd   : > { %v1581_v18 = vpop.f32.mrb[8].mxu1  ;;  %v485_v30 = vrot.slane %v1584_v20, 1  ;;  %v307_v33 = vpop.f32.mrb[9].mxu0  ;;  %vm1658_vm9 = vcmp.eq.s32.totalorder %v548_v39, 15 }
  0xfe   : > { %v501_v28 = vrot.slane %v1581_v18, 1  ;;  %v347_v32 = vpop.f32.mrb[9].mxu1  ;;  %418 = vrot.lane.b32.xlu1 %v387_v7, %s1401_s6  ;;  %v388_v37 = vrot.slane %v307_v33, 7  ;;  %v1598_v38 = vpop.f32.mrb[10].mxu0  ;;  %v1910_v40 = vpack.i.bf16 %v1588_v26, %v1523_v41 }
  0xff   : > { %v404_v36 = vrot.slane %v347_v32, 7  ;;  %v1600_v29 = vpop.f32.mrb[10].mxu1  ;;  %v486_v46 = vsel %vm477_vm1, %v483_v60, %v485_v30  ;;  %v487_v47 = vrot.slane %v1598_v38, 1  ;;  %v1611_v49 = vpop.f32.mrb[11].mxu0  ;;  %v556_v60 = vand.u32 15, %v540_v35 }
 0x100   : > { %v502_v45 = vsel %vm477_vm1, %v499_v61, %v501_v28  ;;  %v503_v48 = vrot.slane %v1600_v29, 1  ;;  %v1613_v50 = vpop.f32.mrb[11].mxu1  ;;  %v390_v51 = vrot.slane %v1611_v49, 7  ;;  %v389_v56 = vsel %vm380_vm2, %v386_v0, %v388_v37 }
 0x101   : > { %v406_v52 = vrot.slane %v1613_v50, 7  ;;  %v405_v53 = vsel %vm380_vm2, %v402_v1, %v404_v36  ;;  %v488_v57 = vsel %vm477_vm1, %v485_v30, %v487_v47  ;;  %v754_v59 = vsel %vm1573_vm5, 0.0, %v486_v46 }
 0x102   : > { %v504_v58 = vsel %vm477_vm1, %v501_v28, %v503_v48  ;;  %436 = vrot.lane.b32.xlu0 %v405_v53, %s1401_s6  ;;  %434 = vrot.lane.b32.xlu1 %v403_v8, %s1401_s6  ;;  %v391_v61 = vsel %vm380_vm2, %v388_v37, %v390_v51  ;;  %v1627_v3 = vadd.f32 %v754_v59, %v301_v62  ;;  %v762_v4 = vsel %vm1603_vm6, 0.0, %v502_v45 }
 0x103   : > { %v407_v2 = vsel %vm380_vm2, %v404_v36, %v406_v52  ;;  %v1629_v1 = vadd.f32 %v488_v57, %v307_v33  ;;  %v1635_v5 = vadd.f32 %v504_v58, %v347_v32  ;;  %v1648_v9 = vadd.f32 %v762_v4, %v1555_v63 }
 0x104   : > { %v1637_v6 = vpop.f32.mrb[12].mxu0  ;;  %v1247_v62 = vpack.i.bf16 %v1627_v3, %v1577_v13  ;;  %vm1668_vm10 = vcmp.eq.s32.totalorder %v556_v60, 15  ;;  %v543_v37 = vand.u32 15, %v1491_v14 }
 0x105   : > { %v1639_v7 = vpop.f32.mrb[12].mxu1  ;;  %v489_v10 = vrot.slane %v1637_v6, 1  ;;  %v317_v28 = vpop.f32.mrb[13].mxu0  ;;  %v1911_v11 = vpack.i.bf16 %v1648_v9, %v1590_v27 }
 0x106   : > { %v505_v12 = vrot.slane %v1639_v7, 1  ;;  %v357_v15 = vpop.f32.mrb[13].mxu1  ;;  %420 = vrot.lane.b32.xlu1 %v389_v56, %s1401_s6  ;;  %422 = vrot.lane.b32.xlu0 %v391_v61, %s1401_s6  ;;  %v392_v32 = vrot.slane %v317_v28, 7  ;;  %v1662_v33 = vpop.f32.mrb[14].mxu0  ;;  %vm559_vm11 = vcmp.eq.s32.totalorder %v543_v37, 0 }
 0x107   : > { %v408_v63 = vrot.slane %v357_v15, 7  ;;  %v1664_v35 = vpop.f32.mrb[14].mxu1  ;;  %v490_v25 = vsel %vm477_vm1, %v487_v47, %v489_v10  ;;  %v491_v44 = vrot.slane %v1662_v33, 1  ;;  %v321_v46 = vpop.f32.mrb[15].mxu0 }
 0x108   : > { %v506_v39 = vsel %vm477_vm1, %v503_v48, %v505_v12  ;;  %v507_v45 = vrot.slane %v1664_v35, 1  ;;  %v361_v53 = vpop.f32.mrb[15].mxu1  ;;  %v394_v56 = vrot.slane %v321_v46, 7  ;;  %v393_v57 = vsel %vm380_vm2, %v390_v51, %v392_v32 }
 0x109   : > { %v410_v58 = vrot.slane %v361_v53, 7  ;;  %v409_v59 = vsel %vm380_vm2, %v406_v52, %v408_v63  ;;  %v492_v60 = vsel %vm477_vm1, %v489_v10, %v491_v44  ;;  %v494_v47 = vsel %vm477_vm1, %v491_v44, %v493_v19 }
 0x10a   : > { %424 = vrot.lane.b32.xlu1 %v393_v57, %s1401_s6  ;;  %v508_v48 = vsel %vm477_vm1, %v505_v12, %v507_v45  ;;  %v525_v61 = vsel %vm477_vm1, %v507_v45, 0.0  ;;  %v758_v4 = vsel %vm1641_vm7, 0.0, %v494_v47  ;;  %v1687_v36 = vadd.f32 %v492_v60, %v317_v28 }
 0x10b   : > { %v766_v51 = vsel %vm1654_vm8, 0.0, %v525_v61  ;;  %v1691_v52 = vadd.f32 %v508_v48, %v357_v15  ;;  %v1693_v10 = vadd.f32 %v758_v4, %v321_v46  ;;  %v397_v19 = vsel %vm380_vm2, %v394_v56, %v396_v31 }
 0x10c   : > { %v1695_v0 = vadd.f32 %v766_v51, %v361_v53  ;;  %v395_v12 = vsel %vm380_vm2, %v392_v32, %v394_v56  ;;  %428 = vrot.lane.b32.xlu0 %v397_v19, %s1401_s6  ;;  %v411_v8 = vsel %vm380_vm2, %v408_v63, %v410_v58  ;;  %v756_v28 = vsel %vm1658_vm9, 0.0, %v490_v25 }
 0x10d   : > { %v764_v15 = vsel %vm1668_vm10, 0.0, %v506_v39  ;;  %v1257_v24 = vpack.i.bf16 %v1693_v10, %v1687_v36  ;;  %v1713_v31 = vadd.f32 %v756_v28, %v1611_v49  ;;  %v529_v39 = vadd.s32 16, %v1491_v14 }
 0x10e   : > { %v1317_v21 = vpack.i.bf16 %v1695_v0, %v1691_v52  ;;  %440 = vrot.lane.b32.xlu1 %v409_v59, %s1401_s6  ;;  %v1716_v32 = vadd.f32 %v764_v15, %v1613_v50  ;;  %v531_v57 = vadd.s32 32, %v1491_v14  ;;  %v539_v47 = vadd.s32 96, %v1491_v14 }
 0x10f   : > { %v1252_v30 = vpack.i.bf16 %v1713_v31, %v1629_v1  ;;  %v545_v45 = vand.u32 15, %v529_v39 }
 0x110   : > { %v1312_v63 = vpack.i.bf16 %v1716_v32, %v1635_v5  ;;  %438 = vrot.lane.b32.xlu0 %v407_v2, %s1401_s6  ;;  %v537_v2 = vadd.s32 80, %v1491_v14  ;;  %v547_v48 = vand.u32 15, %v531_v57  ;;  %v555_v19 = vand.u32 15, %v539_v47 }
 0x111   : > { %vm561_vm12 = vcmp.eq.s32.totalorder %v545_v45, 0 }
 0x112   : > { %426 = vrot.lane.b32.xlu1 %v395_v12, %s1401_s6  ;;  %v553_v56 = vand.u32 15, %v537_v2  ;;  %vm563_vm14 = vcmp.eq.s32.totalorder %v547_v48, 0  ;;  %v533_v12 = vadd.s32 48, %v1491_v14  ;;  %vm571_vm15 = vcmp.eq.s32.totalorder %v555_v19, 0 }
 0x114   : > { %vm569_vm13 = vcmp.eq.s32.totalorder %v553_v56, 0  ;;  %v549_v37 = vand.u32 15, %v533_v12 }
 0x116   : > { %442 = vrot.lane.b32.xlu1 %v411_v8, %s1401_s6  ;;  %vm565_vm0 = vcmp.eq.s32.totalorder %v549_v37, 0 }
 0x162   : > { %v413_v49 = vpop.permute.xlu0 %412 }
 0x163   : > { %v460_v25 = vsel %vm380_vm2, 0.0, %v413_v49  ;;  %v535_v49 = vadd.s32 64, %v1491_v14 }
 0x164   : > { %v607_v50 = vsel %vm559_vm11, 0.0, %v460_v25 }
 0x165   : > { %639 = vrot.lane.b32.xlu0 %v607_v50, %s1401_s6  ;;  %v551_v39 = vand.u32 15, %v535_v49 }
 0x166   : > { %v415_v44 = vpop.permute.xlu0 %414 }
 0x167   : > { %641 = vrot.lane.b32.xlu1 %v415_v44, %s1401_s6  ;;  %v541_v44 = vadd.s32 112, %v1491_v14  ;;  %vm567_vm1 = vcmp.eq.s32.totalorder %v551_v39, 0 }
 0x16a   : > { %v431_v46 = vpop.permute.xlu0 %430 }
 0x16b   : > { %657 = vrot.lane.b32.xlu1 %v431_v46, %s1401_s6 }
 0x16c   : > { %v433_v53 = vpop.permute.xlu1 %432 }
 0x16d   : > { %v617_v61 = vsel %vm569_vm13, 0.0, %v433_v53  ;;  %v557_v53 = vand.u32 15, %v541_v44 }
 0x16e   : > { %v417_v58 = vpop.permute.xlu0 %416 }
 0x16f   : > { %v609_v59 = vsel %vm561_vm12, 0.0, %v417_v58  ;;  %vm573_vm2 = vcmp.eq.s32.totalorder %v557_v53, 0 }
 0x170   : > { %v419_v60 = vpop.permute.xlu1 %418  ;;  %643 = vrot.lane.b32.xlu0 %v609_v59, %s1401_s6 }
 0x171   : > { %645 = vrot.lane.b32.xlu1 %v419_v60, %s1401_s6 }
 0x174   : > { %v437_v4 = vpop.permute.xlu0 %436  ;;  %v435_v51 = vpop.permute.xlu1 %434  ;;  %659 = vrot.lane.b32.xlu0 %v617_v61, %s1401_s6 }
 0x175   : > { %661 = vrot.lane.b32.xlu1 %v435_v51, %s1401_s6  ;;  %v619_v50 = vsel %vm571_vm15, 0.0, %v437_v4 }
 0x178   : > { %v421_v8 = vpop.permute.xlu1 %420  ;;  %v423_v28 = vpop.permute.xlu0 %422 }
 0x179   : > { %v611_v15 = vsel %vm563_vm14, 0.0, %v421_v8  ;;  %649 = vrot.lane.b32.xlu1 %v423_v28, %s1401_s6 }
 0x17a   : > { %647 = vrot.lane.b32.xlu0 %v611_v15, %s1401_s6 }
 0x17c   : > { %v425_v25 = vpop.permute.xlu1 %424 }
 0x17d   : > { %v613_v46 = vsel %vm565_vm0, 0.0, %v425_v25 }
 0x17e   : > { %663 = vrot.lane.b32.xlu0 %v619_v50, %s1401_s6  ;;  %v429_v2 = vpop.permute.xlu0 %428 }
 0x17f   : > { %v615_v57 = vsel %vm567_vm1, 0.0, %v429_v2 }
 0x180   : > { %v441_v45 = vpop.permute.xlu1 %440 }
 0x181   : > { %v621_v59 = vsel %vm573_vm2, 0.0, %v441_v45 }
 0x182   : > { %651 = vrot.lane.b32.xlu0 %v613_v46, %s1401_s6  ;;  %v439_v56 = vpop.permute.xlu0 %438 }
 0x183   : > { %665 = vrot.lane.b32.xlu1 %v439_v56, %s1401_s6 }
 0x184   : > { %v427_v58 = vpop.permute.xlu1 %426 }
 0x186   : > { %655 = vrot.lane.b32.xlu0 %v615_v57, %s1401_s6 }
 0x187   : > { %653 = vrot.lane.b32.xlu1 %v427_v58, %s1401_s6 }
 0x188   : > { %v443_v14 = vpop.permute.xlu1 %442 }
 0x18a   : > { %667 = vrot.lane.b32.xlu0 %v621_v59, %s1401_s6 }
 0x18b   : > { %669 = vrot.lane.b32.xlu1 %v443_v14, %s1401_s6 }
 0x18e   : > { %1243 = vrot.lane.b32.xlu0 %v1242_v34, %s1401_s6 }
 0x18f   : > { %1248 = vrot.lane.b32.xlu1 %v1247_v62, %s1401_s6 }
 0x192   : > { %1253 = vrot.lane.b32.xlu0 %v1252_v30, %s1401_s6 }
 0x193   : > { %1258 = vrot.lane.b32.xlu1 %v1257_v24, %s1401_s6 }
 0x196   : > { %1263 = vrot.lane.b32.xlu0 %v1910_v40, %s1401_s6 }
 0x197   : > { %1268 = vrot.lane.b32.xlu1 %v1911_v11, %s1401_s6 }
 0x1d7   : > { %v640_v13 = vpop.permute.xlu0 %639 }
 0x1d8   : > { %v687_v3 = vadd.f32 %v640_v13, %v1494_v16 }
 0x1d9   : > { %v642_v34 = vpop.permute.xlu1 %641 }
 0x1da   : > { %v688_v1 = vadd.f32 %v642_v34, %v1502_v22 }
 0x1dc   : > { %v1272_v62 = vpack.i.bf16 %v688_v1, %v687_v3 }
 0x1dd   : > { %v658_v31 = vpop.permute.xlu1 %657 }
 0x1de   : > { %1273 = vrot.lane.b32.xlu0 %v1272_v62, %s1401_s6  ;;  %v696_v12 = vadd.f32 %v658_v31, %v1504_v23 }
 0x1e2   : > { %v644_v36 = vpop.permute.xlu0 %643 }
 0x1e3   : > { %v646_v10 = vpop.permute.xlu1 %645  ;;  %v689_v41 = vadd.f32 %v644_v36, %v1528_v43 }
 0x1e4   : > { %v690_v26 = vadd.f32 %v646_v10, %v1541_v54 }
 0x1e6   : > { %v1277_v24 = vpack.i.bf16 %v690_v26, %v689_v41  ;;  %v660_v30 = vpop.permute.xlu0 %659 }
 0x1e7   : > { %v662_v27 = vpop.permute.xlu1 %661  ;;  %v697_v9 = vadd.f32 %v660_v30, %v1525_v42 }
 0x1e8   : > { %v698_v60 = vadd.f32 %v662_v27, %v1543_v55  ;;  %1278 = vrot.lane.b32.xlu1 %v1277_v24, %s1401_s6 }
 0x1ea   : > { %v1282_v16 = vpack.i.bf16 %v698_v60, %v697_v9 }
 0x1eb   : > { %v650_v22 = vpop.permute.xlu1 %649 }
 0x1ec   : > { %v692_v47 = vadd.f32 %v650_v22, %v1598_v38  ;;  %v648_v48 = vpop.permute.xlu0 %647  ;;  %1283 = vrot.lane.b32.xlu1 %v1282_v16, %s1401_s6 }
 0x1ed   : > { %v691_v43 = vadd.f32 %v648_v48, %v1584_v20 }
 0x1ef   : > { %v1287_v61 = vpack.i.bf16 %v692_v47, %v691_v43 }
 0x1f0   : > { %v664_v54 = vpop.permute.xlu0 %663 }
 0x1f1   : > { %1288 = vrot.lane.b32.xlu0 %v1287_v61, %s1401_s6  ;;  %v699_v42 = vadd.f32 %v664_v54, %v1581_v18 }
 0x1f4   : > { %v652_v4 = vpop.permute.xlu0 %651 }
 0x1f5   : > { %v666_v51 = vpop.permute.xlu1 %665  ;;  %v693_v15 = vadd.f32 %v652_v4, %v1637_v6 }
 0x1f6   : > { %v700_v55 = vadd.f32 %v666_v51, %v1600_v29 }
 0x1f8   : > { %v656_v19 = vpop.permute.xlu0 %655  ;;  %v1292_v8 = vpack.i.bf16 %v700_v55, %v699_v42 }
 0x1f9   : > { %v695_v38 = vadd.f32 %v656_v19, %v1496_v17  ;;  %v654_v28 = vpop.permute.xlu1 %653 }
 0x1fa   : > { %v694_v37 = vadd.f32 %v654_v28, %v1662_v33  ;;  %1293 = vrot.lane.b32.xlu0 %v1292_v8, %s1401_s6 }
 0x1fb   : > { %v1307_v20 = vpack.i.bf16 %v696_v12, %v695_v38 }
 0x1fc   : > { %v668_v49 = vpop.permute.xlu0 %667  ;;  %v1297_v25 = vpack.i.bf16 %v694_v37, %v693_v15 }
 0x1fd   : > { %v701_v18 = vadd.f32 %v668_v49, %v1639_v7  ;;  %v670_v29 = vpop.permute.xlu1 %669 }
 0x1fe   : > { %v702_v23 = vadd.f32 %v670_v29, %v1664_v35  ;;  %1308 = vrot.lane.b32.xlu0 %v1307_v20, %s1401_s6  ;;  %1298 = vrot.lane.b32.xlu1 %v1297_v25, %s1401_s6 }
 0x200   : > { %v1302_v17 = vpack.i.bf16 %v702_v23, %v701_v18  ;;  %v1244_v6 = vpop.permute.xlu0 %1243 }
 0x201   : > { %v1249_v33 = vpop.permute.xlu1 %1248  ;;  %v1246_v44 = vunpack.i.h.bf16 %v1244_v6  ;;  %v1245_v5 = vunpack.i.l.bf16 %v1244_v6 }
 0x202   : > { %1313 = vrot.lane.b32.xlu0 %v1312_v63, %s1401_s6  ;;  %1303 = vrot.lane.b32.xlu1 %v1302_v17, %s1401_s6  ;;  %v1251_v46 = vunpack.i.h.bf16 %v1249_v33  ;;  %v1250_v53 = vunpack.i.l.bf16 %v1249_v33 }
 0x204   : > { %v1254_v7 = vpop.permute.xlu0 %1253 }
 0x205   : > { %v1259_v50 = vpop.permute.xlu1 %1258  ;;  %v1256_v10 = vunpack.i.h.bf16 %v1254_v7  ;;  %v1255_v41 = vunpack.i.l.bf16 %v1254_v7 }
 0x206   : > { %1318 = vrot.lane.b32.xlu1 %v1317_v21, %s1401_s6  ;;  %v1261_v16 = vunpack.i.h.bf16 %v1259_v50  ;;  %v1260_v22 = vunpack.i.l.bf16 %v1259_v50 }
 0x208   : > { %v1264_v35 = vpop.permute.xlu0 %1263 }
 0x209   : > { %v1269_v52 = vpop.permute.xlu1 %1268  ;;  %v1266_v47 = vunpack.i.h.bf16 %v1264_v35  ;;  %v1265_v48 = vunpack.i.l.bf16 %v1264_v35 }
 0x20a   : > { %v1271_v11 = vunpack.i.h.bf16 %v1269_v52  ;;  %v1270_v13 = vunpack.i.l.bf16 %v1269_v52 }
 0x250   : > { %v1274_v39 = vpop.permute.xlu0 %1273 }
 0x251   : > { %v1276_v32 = vunpack.i.h.bf16 %v1274_v39  ;;  %v1275_v63 = vunpack.i.l.bf16 %v1274_v39 }
 0x253   : > { %v913_v2 = vsel %vm911_vm3, %v1276_v32, %v1246_v44  ;;  %v912_v45 = vsel %vm911_vm3, %v1275_v63, %v1245_v5 }
 0x254   : > { %v1152_v0 = vpack.c.bf16 %v913_v2, %v912_v45 }
 0x256   : > { %1153 = vst [vmem:[%s1811_s14] sm:$0xff] %v1152_v0  }
 0x25a   : > { %v1279_v21 = vpop.permute.xlu1 %1278 }
 0x25b   : > { %v1281_v56 = vunpack.i.h.bf16 %v1279_v21  ;;  %v1280_v57 = vunpack.i.l.bf16 %v1279_v21 }
 0x25d   : > { %v914_v58 = vsel %vm911_vm3, %v1280_v57, %v1250_v53  ;;  %v915_v59 = vsel %vm911_vm3, %v1281_v56, %v1251_v46 }
 0x25e   : > { %v1157_v14 = vpack.c.bf16 %v915_v59, %v914_v58  ;;  %v1284_v40 = vpop.permute.xlu1 %1283 }
 0x25f   : > { %v1286_v34 = vunpack.i.h.bf16 %v1284_v40  ;;  %v1285_v3 = vunpack.i.l.bf16 %v1284_v40 }
 0x260   : > { %1189 = vst [vmem:[%s1811_s14 + $0x8] sm:$0xff] %v1157_v14  }
 0x261   : > { %v922_v1 = vsel %vm911_vm3, %v1285_v3, %v1270_v13  ;;  %v923_v62 = vsel %vm911_vm3, %v1286_v34, %v1271_v11 }
 0x262   : > { %v1177_v31 = vpack.c.bf16 %v923_v62, %v922_v1 }
 0x263   : > { %v1289_v36 = vpop.permute.xlu0 %1288 }
 0x264   : > { %1193 = vst [vmem:[%s1811_s14 + $0x28] sm:$0xff] %v1177_v31   ;;  %v1291_v26 = vunpack.i.h.bf16 %v1289_v36  ;;  %v1290_v24 = vunpack.i.l.bf16 %v1289_v36 }
 0x266   : > { %v917_v30 = vsel %vm911_vm3, %v1291_v26, %v1256_v10  ;;  %v916_v27 = vsel %vm911_vm3, %v1290_v24, %v1255_v41 }
 0x267   : > { %v1162_v9 = vpack.c.bf16 %v917_v30, %v916_v27 }
 0x269   : > { %1190 = vst [vmem:[%s1811_s14 + $0x10] sm:$0xff] %v1162_v9  }
 0x26c   : > { %v1294_v60 = vpop.permute.xlu0 %1293 }
 0x26d   : > { %v1296_v37 = vunpack.i.h.bf16 %v1294_v60  ;;  %v1295_v49 = vunpack.i.l.bf16 %v1294_v60 }
 0x270   : > { %v1309_v43 = vpop.permute.xlu0 %1308  ;;  %v1299_v61 = vpop.permute.xlu1 %1298 }
 0x271   : > { %v1311_v54 = vunpack.i.h.bf16 %v1309_v43  ;;  %v1310_v4 = vunpack.i.l.bf16 %v1309_v43  ;;  %v1301_v51 = vunpack.i.h.bf16 %v1299_v61  ;;  %v1300_v42 = vunpack.i.l.bf16 %v1299_v61 }
 0x273   : > { %v921_v55 = vsel %vm911_vm3, %v1311_v54, %v1266_v47  ;;  %v920_v19 = vsel %vm911_vm3, %v1310_v4, %v1265_v48  ;;  %v918_v12 = vsel %vm911_vm3, %v1300_v42, %v1260_v22  ;;  %v919_v8 = vsel %vm911_vm3, %v1301_v51, %v1261_v16 }
 0x274   : > { %v1172_v38 = vpack.c.bf16 %v921_v55, %v920_v19  ;;  %v1167_v28 = vpack.c.bf16 %v919_v8, %v918_v12  ;;  %v1314_v15 = vpop.permute.xlu0 %1313  ;;  %v1304_v20 = vpop.permute.xlu1 %1303 }
 0x275   : > { %v1316_v25 = vunpack.i.h.bf16 %v1314_v15  ;;  %v1315_v18 = vunpack.i.l.bf16 %v1314_v15  ;;  %v1306_v7 = vunpack.i.h.bf16 %v1304_v20  ;;  %v1305_v33 = vunpack.i.l.bf16 %v1304_v20 }
 0x276   : > { %1192 = vst [vmem:[%s1811_s14 + $0x20] sm:$0xff] %v1172_v38   ;;  %1191 = vst [vmem:[%s1811_s14 + $0x18] sm:$0xff] %v1167_v28  }
 0x277   : > { %v924_v29 = vsel %vm911_vm3, %v1295_v49, %v1315_v18  ;;  %v925_v23 = vsel %vm911_vm3, %v1296_v37, %v1316_v25 }
 0x278   : > { %v1182_v17 = vpack.c.bf16 %v925_v23, %v924_v29  ;;  %v1319_v6 = vpop.permute.xlu1 %1318 }
 0x279   : > { %v1321_v35 = vunpack.i.h.bf16 %v1319_v6  ;;  %v1320_v50 = vunpack.i.l.bf16 %v1319_v6 }
 0x27a   : > { %1194 = vst [vmem:[%s1811_s14 + $0x30] sm:$0xff] %v1182_v17  }
 0x27b   : > { %v926_v39 = vsel %vm911_vm3, %v1305_v33, %v1320_v50  ;;  %v927_v44 = vsel %vm911_vm3, %v1306_v7, %v1321_v35 }
 0x27c   : > { %v1187_v5 = vpack.c.bf16 %v927_v44, %v926_v39 }
 0x27e   : > { %1195 = vst [vmem:[%s1811_s14 + $0x38] sm:$0xff] %v1187_v5  }
 0x27f   : > { %1349 = shalt.err (!%p1346_p3)
}
 0x280   : > { %s1350_s28 = scalar_lea.hbm %s1839_s23, 1024  ;;  %s1354_s3 = scalar_lea.hbm %s1891_s2, 4096 }
 0x281   : > { %p1351_p4 = scmp.ne.s32.totalorder %s1839_s23, %s1350_s28  ;;  %p1355_p9 = scmp.lt.u32.totalorder %s1839_s23, %s1891_s2 }
 0x282   : > { %p1356_p10 = scmp.lt.u32.totalorder %s1354_s3, %s1350_s28  ;;  %p1358_p12 = scmp.lt.u32.totalorder %s1350_s28, %s1839_s23 }
 0x283   : > { %p1352_p7 = pnand %p1351_p4, %p1457_p5 }
 0x284   : > { %p1357_p11 = por %p1356_p10, %p1355_p9 }
 0x285   : > { %p1353_p8 = pneg %p1352_p7 }
 0x286   : > { %p1359_p13 = por %p1358_p12, %p1357_p11 }
 0x288   : > { %p1360_p0 = pnand %p1359_p13, %p1353_p8 }
 0x28a   : > { %1363 = shalt.err (!%p1360_p0)
}
 0x28b   : > { %s1403_s7 = smov 4  }
 0x28c   : > { %1200 = dma.vmem_to_hbm [thread:$0]  (%p1457_p5), %s1841_s17, 1024, %s1839_s23, %s1846_s13, %s1401_s6, %s1401_s6, %s1403_s7  }
 0x28d PF: > { %p1206_p1 = scmp.ge.s32.totalorder %s1398_s12, 2  ;;  %s1037_s8 = sand.u32 1, %s1386_s9  }
 0x28e   : > { %s1038_s14 = scalar_lea.sflag [#allocation3], %s1037_s8 }
 0x28f   : > { %p1203_p2 = pnand %p1206_p1, %p1461_p6 }
 0x291   : > { %1381 = dma.done.wait (!%p1203_p2), %s1038_s14, 1024  }
 0x292   : > { %1383 = vsyncadd (!%p1203_p2), %s1038_s14, 4294966272  ;;  %p12_p3 = scmp.ge.s32.totalorder %s1444_s15, 6   ;;  %s1912_s9 = smov %s1390_s10 }
 0x293   : > { %s1913_s10 = smov %s1394_s11  ;;  %s1914_s11 = smov %s1455_s18 }
 0x294   : > { %s1915_s12 = smov %s1444_s15  ;;  %14 = sbr.rel (!%p12_p3) target bundleno = 3 (0x3), region = 63 }
 0x29b   :  { %1043 = vsyncpa [#allocation3], 1 }
 0x29c   :  { %1045 = vsyncpa [#allocation3 + $0x1], 1 }

</bundles_post_ra>
